<compile_context>
chip_gen: v6e
topology: v6e:2x2x1
jax: 0.10.0
libtpu: 0.0.40
codegen_flags: <defaults>
</compile_context>

<pallas_src>
import functools

import jax
import jax.numpy as jnp
from jax.experimental import pallas as pl
from jax.experimental.pallas import tpu as pltpu

ALPHA = 0.8
GAMMA = 2
LANES = 128
SUBLANES = 8


def _focal_bce_kernel(x_ref, t_ref, out_ref, acc_ref, *,
                      inv_n, alpha, gamma, fuse_epilogue):
    """Accumulates BCE for one TensorCore's share of blocks; fuses the epilogue."""
    i = pl.program_id(1)
    n_inner = pl.num_programs(1)

    @pl.when(i == 0)
    def _():
        acc_ref[...] = jnp.zeros_like(acc_ref)

    x = x_ref[...]          # f32 logits
    t = t_ref[...]          # f32 targets (0/1 or soft labels)

    # Stable BCE-with-logits.  Equals -(t*log(sigmoid(x)) + (1-t)*log(1-sigmoid(x)))
    # for |x| <~ 88 (where PyTorch's -100 clamp never engages).  Sentinel-padded
    # tail elements (x = -100, t = 0) contribute exactly 0.
    bce = jnp.maximum(x, 0.0) - x * t + jnp.log(1.0 + jnp.exp(-jnp.abs(x)))

    br = x_ref.shape[0]
    # (br,128) -> (br//8, 8, 128) is layout-trivial; summing the leading axis is
    # plain vreg adds folded into the single-vreg-row accumulator (1 ld + 1 st).
    acc_ref[...] += bce.reshape(br // SUBLANES, SUBLANES, LANES).sum(axis=0)

    @pl.when(i == n_inner - 1)
    def _():
        s = jnp.sum(acc_ref[...], axis=1, keepdims=True)   # lane reduce    -> (8,1)
        s = jnp.sum(s, axis=0, keepdims=True)               # sublane reduce -> (1,1)
        if fuse_epilogue:
            # Full focal transform in-kernel; wrapper only slices out a scalar.
            bce_mean = s * inv_n
            d = 1.0 - jnp.exp(-bce_mean)
            mod = d * d if gamma == 2 else d ** gamma       # avoid pow for gamma=2
            res = alpha * mod * bce_mean
        else:
            res = s   # per-core partial BCE sum; tiny scalar epilogue in wrapper
        out_ref[...] = jnp.broadcast_to(res, (SUBLANES, LANES))


def focal_loss(inputs, targets, alpha=ALPHA, gamma=GAMMA,
               block_rows=1024, num_core_splits=2):
    """Pallas implementation of FocalLoss.forward (reduction='mean')."""
    n = inputs.size
    x = inputs.reshape(-1).astype(jnp.float32)
    t = targets.reshape(-1).astype(jnp.float32)   # no bf16 round trip

    # Row geometry: (rows, 128) slab with rows a multiple of 8 (f32 sublanes).
    rows = pl.cdiv(pl.cdiv(n, LANES), SUBLANES) * SUBLANES
    br = min(block_rows, rows)                    # both multiples of 8
    num_blocks = pl.cdiv(rows, br)

    # v7x megacore: round the block count UP to a multiple of the core split so the
    # "parallel" axis always engages both TensorCores (extra blocks are sentinel-
    # padded and contribute exactly 0).  v5e/v6e: single TC, harmless no-op.
    if num_core_splits > 1 and num_blocks >= num_core_splits:
        num_blocks = pl.cdiv(num_blocks, num_core_splits) * num_core_splits
        n_outer = num_core_splits
    else:
        n_outer = 1
    n_inner = num_blocks // n_outer
    rows = num_blocks * br

    n_pad = rows * LANES
    if n_pad != n:
        # Sentinel pad (logits=-100, targets=0) => exactly 0 BCE contribution, so
        # the kernel needs no tail mask at all.  The tested shape takes no pad.
        # TODO(synk): for very large ragged N, keep 8x128 alignment upstream to
        # avoid this extra copy pass over HBM.
        x = jnp.pad(x, (0, n_pad - n), constant_values=-100.0)
        t = jnp.pad(t, (0, n_pad - n), constant_values=0.0)

    x2 = x.reshape(rows, LANES)
    t2 = t.reshape(rows, LANES)

    fuse_epilogue = (n_outer == 1)
    kernel = functools.partial(
        _focal_bce_kernel,
        inv_n=1.0 / float(n),
        alpha=float(alpha),
        gamma=gamma,
        fuse_epilogue=fuse_epilogue,
    )

    out = pl.pallas_call(
        kernel,
        out_shape=jax.ShapeDtypeStruct((n_outer * SUBLANES, LANES), jnp.float32),
        grid_spec=pltpu.PrefetchScalarGridSpec(
            num_scalar_prefetch=0,
            grid=(n_outer, n_inner),
            in_specs=[
                pl.BlockSpec((br, LANES), lambda c, i: (c * n_inner + i, 0)),
                pl.BlockSpec((br, LANES), lambda c, i: (c * n_inner + i, 0)),
            ],
            out_specs=pl.BlockSpec((SUBLANES, LANES), lambda c, i: (c, 0)),
            scratch_shapes=[pltpu.VMEM((SUBLANES, LANES), jnp.float32)],
        ),
        compiler_params=pltpu.CompilerParams(
            dimension_semantics=("parallel", "arbitrary"),
        ),
    )(x2, t2)

    if fuse_epilogue:
        # Kernel already produced the focal loss (replicated across the block).
        return out[0, 0]

    # n_outer > 1: combine the per-core BCE sums (tiny scalar-only epilogue).
    core_sums = out.reshape(n_outer, SUBLANES, LANES)[:, 0, 0]
    bce_mean = jnp.sum(core_sums) / jnp.float32(n)
    d = 1.0 - jnp.exp(-bce_mean)
    mod = d * d if gamma == 2 else d ** gamma
    return alpha * mod * bce_mean


def _ref_focal_loss(inputs, targets, alpha=ALPHA, gamma=GAMMA):
    """Pure-JAX reference emulating PyTorch F.sigmoid + F.binary_cross_entropy."""
    p = jax.nn.sigmoid(inputs.astype(jnp.float32)).reshape(-1)
    t = targets.astype(jnp.float32).reshape(-1)
    log_p = jnp.maximum(jnp.log(p), -100.0)
    log_1mp = jnp.maximum(jnp.log(1.0 - p), -100.0)
    bce = jnp.mean(-(t * log_p + (1.0 - t) * log_1mp))
    bce_exp = jnp.exp(-bce)
    return alpha * (1.0 - bce_exp) ** gamma * bce


if __name__ == "__main__":
    key = jax.random.PRNGKey(0)
    k1, k2 = jax.random.split(key)

    B, C, H, W = 2, 4, 16, 16  # NCHW, as in the PyTorch module's usage
    inputs = jax.random.normal(k1, (B, C, H, W), dtype=jnp.float32)   # logits
    targets = (jax.random.uniform(k2, (B, C, H, W)) > 0.5).astype(jnp.float32)

    loss = focal_loss(inputs, targets)
    jax.block_until_ready(loss)

    ref = _ref_focal_loss(inputs, targets)
    assert jnp.allclose(loss, ref, rtol=1e-4, atol=1e-6), (loss, ref)

    print("KERNEL_OK")
</pallas_src>

<mosaic_0001>
module attributes {stable_mosaic.version = 11 : i64} {
  func.func @_focal_bce_kernel(%arg0: i32, %arg1: i32, %arg2: memref<16x128xf32, #tpu.memory_space<vmem>>, %arg3: memref<16x128xf32, #tpu.memory_space<vmem>>, %arg4: memref<8x128xf32, #tpu.memory_space<vmem>>, %arg5: memref<8x128xf32, #tpu.memory_space<vmem>>) attributes {dimension_semantics = [#tpu.dimension_semantics<parallel>, #tpu.dimension_semantics<arbitrary>], iteration_bounds = array<i64: 1, 1>, scalar_prefetch = 0 : i64, scratch_operands = 1 : i64, tpu.core_type = #tpu.core_type<tc>, window_params = [{transform_indices = @transform_0, window_bounds = array<i64: 16, 128>}, {transform_indices = @transform_1, window_bounds = array<i64: 16, 128>}, {transform_indices = @transform_2, window_bounds = array<i64: 8, 128>}]} {
    %c0_i32 = arith.constant 0 : i32
    %0 = arith.cmpi eq, %arg1, %c0_i32 : i32
    %1 = arith.extui %0 : i1 to i32
    %c0_i32_0 = arith.constant 0 : i32
    %2 = arith.cmpi ne, %1, %c0_i32_0 : i32
    scf.if %2 {
      %cst_13 = arith.constant 0.000000e+00 : f32
      %25 = vector.broadcast %cst_13 : f32 to vector<8x128xf32>
      %c0_14 = arith.constant 0 : index
      %c0_15 = arith.constant 0 : index
      %26 = vector.load %arg5[%c0_14, %c0_15] : memref<8x128xf32, #tpu.memory_space<vmem>>, vector<8x128xf32>
      tpu.vector_store %arg5[%c0_14, %c0_15], %25 {strides = array<i32>} : memref<8x128xf32, #tpu.memory_space<vmem>>, vector<8x128xf32>,
    } else {
    }
    %c0 = arith.constant 0 : index
    %c0_1 = arith.constant 0 : index
    %3 = vector.load %arg2[%c0, %c0_1] : memref<16x128xf32, #tpu.memory_space<vmem>>, vector<16x128xf32>
    %c0_2 = arith.constant 0 : index
    %c0_3 = arith.constant 0 : index
    %4 = vector.load %arg3[%c0_2, %c0_3] : memref<16x128xf32, #tpu.memory_space<vmem>>, vector<16x128xf32>
    %cst = arith.constant 0.000000e+00 : f32
    %5 = vector.broadcast %cst : f32 to vector<16x128xf32>
    %6 = arith.maximumf %3, %5 : vector<16x128xf32>
    %7 = arith.mulf %3, %4 : vector<16x128xf32>
    %8 = arith.subf %6, %7 : vector<16x128xf32>
    %9 = math.absf %3 : vector<16x128xf32>
    %cst_4 = arith.constant 0.000000e+00 : f32
    %10 = vector.broadcast %cst_4 : f32 to vector<16x128xf32>
    %11 = arith.subf %10, %9 : vector<16x128xf32>
    %12 = math.exp %11 : vector<16x128xf32>
    %cst_5 = arith.constant 1.000000e+00 : f32
    %13 = vector.broadcast %cst_5 : f32 to vector<16x128xf32>
    %14 = arith.addf %13, %12 : vector<16x128xf32>
    %15 = math.log %14 : vector<16x128xf32>
    %16 = arith.addf %8, %15 : vector<16x128xf32>
    %c0_6 = arith.constant 0 : index
    %c0_7 = arith.constant 0 : index
    %17 = vector.load %arg5[%c0_6, %c0_7] : memref<8x128xf32, #tpu.memory_space<vmem>>, vector<8x128xf32>
    %18 = vector.shape_cast %16 : vector<16x128xf32> to vector<2x8x128xf32>
    %cst_8 = arith.constant dense<0.000000e+00> : vector<8x128xf32>
    %19 = vector.multi_reduction <add>, %18, %cst_8 [0] : vector<2x8x128xf32> to vector<8x128xf32>
    %20 = arith.addf %17, %19 : vector<8x128xf32>
    %c0_9 = arith.constant 0 : index
    %c0_10 = arith.constant 0 : index
    %21 = vector.load %arg5[%c0_9, %c0_10] : memref<8x128xf32, #tpu.memory_space<vmem>>, vector<8x128xf32>
    tpu.vector_store %arg5[%c0_9, %c0_10], %20 {strides = array<i32>} : memref<8x128xf32, #tpu.memory_space<vmem>>, vector<8x128xf32>,
    %c0_i32_11 = arith.constant 0 : i32
    %22 = arith.cmpi eq, %arg1, %c0_i32_11 : i32
    %23 = arith.extui %22 : i1 to i32
    %c0_i32_12 = arith.constant 0 : i32
    %24 = arith.cmpi ne, %23, %c0_i32_12 : i32
    scf.if %24 {
      %c0_13 = arith.constant 0 : index
      %c0_14 = arith.constant 0 : index
      %25 = vector.load %arg5[%c0_13, %c0_14] : memref<8x128xf32, #tpu.memory_space<vmem>>, vector<8x128xf32>
      %cst_15 = arith.constant dense<0.000000e+00> : vector<8xf32>
      %26 = vector.multi_reduction <add>, %25, %cst_15 [1] : vector<8x128xf32> to vector<8xf32>
      %27 = vector.shape_cast %26 : vector<8xf32> to vector<8x1xf32>
      %cst_16 = arith.constant dense<0.000000e+00> : vector<1xf32>
      %28 = vector.multi_reduction <add>, %27, %cst_16 [0] : vector<8x1xf32> to vector<1xf32>
      %29 = vector.shape_cast %28 : vector<1xf32> to vector<1x1xf32>
      %cst_17 = arith.constant 4.8828125E-4 : f32
      %30 = vector.broadcast %cst_17 : f32 to vector<1x1xf32>
      %31 = arith.mulf %29, %30 : vector<1x1xf32>
      %cst_18 = arith.constant 0.000000e+00 : f32
      %32 = vector.broadcast %cst_18 : f32 to vector<1x1xf32>
      %33 = arith.subf %32, %31 : vector<1x1xf32>
      %34 = math.exp %33 : vector<1x1xf32>
      %cst_19 = arith.constant 1.000000e+00 : f32
      %35 = vector.broadcast %cst_19 : f32 to vector<1x1xf32>
      %36 = arith.subf %35, %34 : vector<1x1xf32>
      %37 = arith.mulf %36, %36 : vector<1x1xf32>
      %cst_20 = arith.constant 8.000000e-01 : f32
      %38 = vector.broadcast %cst_20 : f32 to vector<1x1xf32>
      %39 = arith.mulf %38, %37 : vector<1x1xf32>
      %40 = arith.mulf %39, %31 : vector<1x1xf32>
      %41 = vector.shape_cast %40 : vector<1x1xf32> to vector<1x1xf32>
      %42 = vector.broadcast %41 : vector<1x1xf32> to vector<8x128xf32>
      %c0_21 = arith.constant 0 : index
      %c0_22 = arith.constant 0 : index
      %43 = vector.load %arg4[%c0_21, %c0_22] : memref<8x128xf32, #tpu.memory_space<vmem>>, vector<8x128xf32>
      tpu.vector_store %arg4[%c0_21, %c0_22], %42 {strides = array<i32>} : memref<8x128xf32, #tpu.memory_space<vmem>>, vector<8x128xf32>,
    } else {
    }
    return
  }
  func.func @transform_0(%arg0: i32, %arg1: i32) -> (i32, i32) {
    %c1_i32 = arith.constant 1 : i32
    %0 = arith.muli %arg0, %c1_i32 : i32
    %1 = arith.addi %0, %arg1 : i32
    %c0_i32 = arith.constant 0 : i32
    %c0_i32_0 = arith.constant 0 : i32
    return %1, %c0_i32 : i32, i32
  }
  func.func @transform_1(%arg0: i32, %arg1: i32) -> (i32, i32) {
    %c1_i32 = arith.constant 1 : i32
    %0 = arith.muli %arg0, %c1_i32 : i32
    %1 = arith.addi %0, %arg1 : i32
    %c0_i32 = arith.constant 0 : i32
    %c0_i32_0 = arith.constant 0 : i32
    return %1, %c0_i32 : i32, i32
  }
  func.func @transform_2(%arg0: i32, %arg1: i32) -> (i32, i32) {
    %c0_i32 = arith.constant 0 : i32
    %c0_i32_0 = arith.constant 0 : i32
    return %arg0, %c0_i32 : i32, i32
  }
}

</mosaic_0001>

<bundles_post_ra>
// kernel: tpu_custom_call.1
= control target key start
LH: loop header
LB: loop body
LE: loop exit
PB: predicated region body
PF: predicated region fallthrough
CT: control target
= control target key end

     0   :  { %7 = vsyncpa [#allocation4], 0  ;;  %s234_s0 = inlined_call_operand.hbm [shape: f32[16,128], index: 0, kind: input, shape index: {}]   ;;  %s235_s1 = inlined_call_operand.hbm [shape: f32[16,128], index: 1, kind: input, shape index: {}]   ;;  %s236_s2 = inlined_call_operand.hbm [shape: f32[8,128], index: 2, kind: output, shape index: {}]  }
   0x1   :  { %8 = vsyncpa [#allocation7], 0 }
   0x2   :  { %9 = vsyncpa [#allocation5], 0  ;;  %s205_s9 = smov [#allocation3]  }
   0x3   :  { %s19_s10 = sshll.u32 %s205_s9, 4  ;;  %s20_s10 = int_to_ptr.vmem [resolvable:$true] %s19_s10 }
   0x4   :  { %s147_s11 = scalar_lea.vmem %s20_s10, 256  ;;  %p152_p1 = scmp.lt.s32.totalorder %s20_s10, %s20_s10 }
   0x5   :  { %p148_p0 = scmp.ne.s32.totalorder %s20_s10, %s147_s11  ;;  %p153_p2 = scmp.lt.s32.totalorder %s147_s11, %s147_s11 }
   0x7   :  { %p154_p3 = por %p153_p2, %p152_p1 }
   0x9   :  { %p155_p4 = pnand %p154_p3, %p148_p0 }
   0xb   :  { %158 = shalt.err (!%p155_p4)
}
   0xc   :  { %s206_s12 = smov 128   ;;  %s207_s13 = smov 8  }
   0xd   :  { %25 = dma.hbm_to_vmem [thread:$0]  %s234_s0, 256, %s20_s10, [#allocation4], %s206_s12, %s206_s12, %s207_s13  }
   0xe   :  { %s208_s16 = smov [#allocation6]  }
   0xf   :  { %s35_s17 = sshll.u32 %s208_s16, 4  ;;  %s36_s17 = int_to_ptr.vmem [resolvable:$true] %s35_s17 }
  0x10   :  { %s167_s18 = scalar_lea.vmem %s36_s17, 256  ;;  %p172_p6 = scmp.lt.s32.totalorder %s36_s17, %s36_s17 }
  0x11   :  { %p168_p5 = scmp.ne.s32.totalorder %s36_s17, %s167_s18  ;;  %p173_p7 = scmp.lt.s32.totalorder %s167_s18, %s167_s18 }
  0x13   :  { %p174_p8 = por %p173_p7, %p172_p6 }
  0x15   :  { %p175_p9 = pnand %p174_p8, %p168_p5 }
  0x17   :  { %178 = shalt.err (!%p175_p9)
}
  0x18   :  { %41 = dma.hbm_to_vmem [thread:$0]  %s235_s1, 256, %s36_s17, [#allocation7], %s206_s12, %s206_s12, %s207_s13  }
  0x19   :  { %199 = dma.done.wait [#allocation4], 256  }
  0x1a   :  { %200 = vsyncadd [#allocation4], 4294967040 }
  0x1b   :  { %201 = dma.done.wait [#allocation7], 256  }
  0x1c   :  { %202 = vsyncadd [#allocation7], 4294967040  ;;  %v57_v0 = vld [vmem:[#allocation3] sm:$0xff]  ;;  %v58_v1 = vld [vmem:[#allocation3 + $0x8] sm:$0xff]  ;;  %s209_s0 = smov [#allocation8]  }
  0x1d   :  { %v67_v2 = vand.u32 2147483647, %v57_v0  ;;  %v68_v3 = vand.u32 2147483647, %v58_v1  ;;  %v59_v12 = vld [vmem:[#allocation6] sm:$0xff]  ;;  %v60_v13 = vld [vmem:[#allocation6 + $0x8] sm:$0xff] }
  0x1e   :  { %v61_v14 = vmax.f32 %v57_v0, 0.0  ;;  %v63_v15 = vmul.f32 %v59_v12, %v57_v0  ;;  %v62_v16 = vmax.f32 %v58_v1, 0.0  ;;  %v64_v17 = vmul.f32 %v60_v13, %v58_v1  ;;  %s114_s1 = sshll.u32 %s209_s0, 4  ;;  %s115_s1 = int_to_ptr.vmem [resolvable:$true] %s114_s1 }
  0x1f   :  { %v69_v4 = vsub.f32 0.0, %v67_v2  ;;  %v70_v5 = vsub.f32 0.0, %v68_v3  ;;  %s179_s21 = scalar_lea.vmem %s115_s1, 128  ;;  %p184_p11 = scmp.lt.s32.totalorder %s115_s1, %s115_s1 }
  0x20   :  { %v65_v18 = vsub.f32 %v61_v14, %v63_v15  ;;  %v66_v20 = vsub.f32 %v62_v16, %v64_v17  ;;  %p180_p10 = scmp.ne.s32.totalorder %s115_s1, %s179_s21  ;;  %p185_p12 = scmp.lt.s32.totalorder %s179_s21, %s179_s21 }
  0x21   :  { %v71_v6 = vmul.f32 1.442695, %v69_v4  ;;  %v73_v7 = vmul.f32 1.442695, %v70_v5 }
  0x22   :  { %p186_p13 = por %p185_p12, %p184_p11 }
  0x23   :  { %129 = vpow2.f32 %v71_v6 }
  0x24   :  { %131 = vpow2.f32 %v73_v7  ;;  %p187_p0 = pnand %p186_p13, %p180_p10 }
  0x30   :  { %v130_v8 = vpop.eup %129 }
  0x31   :  { %v132_v9 = vpop.eup %131  ;;  %v75_v10 = vadd.f32 1.0, %v130_v8 }
  0x32   :  { %v76_v11 = vadd.f32 1.0, %v132_v9 }
  0x33   :  { %133 = vlog2.f32 %v75_v10 }
  0x34   :  { %135 = vlog2.f32 %v76_v11 }
  0x40   :  { %v134_v19 = vpop.eup %133 }
  0x41   :  { %v136_v21 = vpop.eup %135  ;;  %v78_v22 = vmul.f32 0.6931472, %v134_v19 }
  0x42   :  { %v80_v23 = vmul.f32 0.6931472, %v136_v21 }
  0x43   :  { %v81_v24 = vadd.f32 %v78_v22, %v65_v18 }
  0x44   :  { %v82_v25 = vadd.f32 %v80_v23, %v66_v20 }
  0x46   :  { %v84_v26 = vadd.f32 %v82_v25, %v81_v24 }
  0x48   :  { %91 = vadd.xlane.f32.xlu0 %v84_v26 }
  0xd1   :  { %v92_v27 = vpop.xlane.xlu0 %91 }
  0xd2   :  { %v93_v28 = vrot.slane %v92_v27, 4 }
  0xd4   :  { %v94_v29 = vadd.f32 %v93_v28, %v92_v27 }
  0xd6   :  { %v95_v30 = vrot.slane %v94_v29, 2 }
  0xd8   :  { %v96_v31 = vadd.f32 %v95_v30, %v94_v29 }
  0xda   :  { %v97_v32 = vrot.slane %v96_v31, 1 }
  0xdc   :  { %v98_v33 = vadd.f32 %v97_v32, %v96_v31 }
  0xde   :  { %v99_v34 = vmul.f32 0.00048828125, %v98_v33 }
  0xe0   :  { %v100_v35 = vsub.f32 0.0, %v99_v34 }
  0xe2   :  { %v101_v36 = vmul.f32 1.442695, %v100_v35 }
  0xe4   :  { %137 = vpow2.f32 %v101_v36 }
  0xf1   :  { %v138_v37 = vpop.eup %137 }
  0xf2   :  { %v103_v38 = vsub.f32 1.0, %v138_v37 }
  0xf4   :  { %v104_v39 = vmul.f32 %v103_v38, %v103_v38 }
  0xf6   :  { %v105_v40 = vmul.f32 0.8, %v104_v39 }
  0xf8   :  { %v106_v41 = vmul.f32 %v105_v40, %v99_v34 }
  0xfa   :  { %107 = vst [vmem:[#allocation8] sm:$0xff] %v106_v41 }
  0xfb   :  { %190 = shalt.err (!%p187_p0)
}
  0xfc   :  { %117 = dma.vmem_to_hbm [thread:$0]  %s115_s1, 128, %s236_s2, [#allocation5]  }
  0xfd   :  { %203 = dma.done.wait [#allocation5], 128  }
  0xfe   :  { %204 = vsyncadd [#allocation5], 4294967168 }
  0xff   :  { %121 = vsyncpa [#allocation4], 1 }
 0x100   :  { %122 = vsyncpa [#allocation7], 1 }
 0x101   :  { %123 = vsyncpa [#allocation5], 1 }

</bundles_post_ra>
